<compile_context>
chip_gen: v7x
topology: tpu7x:2x2x1
jax: 0.10.0
libtpu: 0.0.40
codegen_flags: <defaults>
</compile_context>

<pallas_src>
import functools

import jax
import jax.numpy as jnp
from jax.experimental import pallas as pl
from jax.experimental.pallas import tpu as pltpu


def _global_text_kernel(*refs, bt, lp, tile_d, num_tiles, masked):
    # refs (masked):    x_ref (Bt, Lp, D), m_ref (Bt, Lp, 1), wt_ref (D, tile_d),
    #                   b_ref (1, tile_d), out_ref (1, Bt, tile_d)
    # refs (no mask):   same without m_ref.
    if masked:
        x_ref, m_ref, wt_ref, b_ref, out_ref = refs
    else:
        x_ref, wt_ref, b_ref, out_ref = refs
        m_ref = None

    x = x_ref[...]                                            # (Bt, Lp, D)
    d_in = x.shape[-1]
    x2 = x.reshape(bt * lp, d_in)                             # layout-free (Lp % 8 == 0)

    # Linear over the hidden dim on the MXU with batched M = Bt*Lp rows.
    logits = jnp.dot(x2, wt_ref[...], preferred_element_type=jnp.float32)
    logits = logits + b_ref[...].astype(jnp.float32)          # (Bt*Lp, tile_d)
    logits = logits.reshape(bt, lp, tile_d)

    if masked:
        # masked_fill(mask == 0, -1e9); padded rows carry mask = 0.
        logits = jnp.where(m_ref[...] == 0, jnp.float32(-1e9), logits)

    # Numerically stable softmax over the sequence axis; keep it unnormalized and
    # fold the 1/sum into the final (Bt, tile_d) reduce result.
    logits = logits - jnp.max(logits, axis=1, keepdims=True)
    e = jnp.exp(logits)                                       # (Bt, Lp, tile_d)
    denom = jnp.sum(e, axis=1)                                # (Bt, tile_d)

    if num_tiles == 1:
        x_tile = x                                            # (Bt, Lp, tile_d == D)
    else:
        j = pl.program_id(0)
        start = pl.multiple_of(j * tile_d, tile_d)            # tile_d % 128 == 0
        x_tile = x_ref[:, :, pl.ds(start, tile_d)]            # (Bt, Lp, tile_d)

    num = jnp.sum(x_tile.astype(jnp.float32) * e, axis=1)     # (Bt, tile_d)
    out_ref[0] = (num / denom).astype(out_ref.dtype)


def _pick_tile_d(d, itemsize, budget_bytes=8 * 1024 * 1024):
    """Largest lane-aligned hidden tile whose double-buffered W^T block fits budget."""
    if 2 * d * d * itemsize <= budget_bytes:
        return d                                              # resident W^T
    for cand in (1024, 512, 256, 128):
        if d % cand == 0 and 2 * d * cand * itemsize <= budget_bytes:
            return cand
    return d                                                  # fallback (tiny/odd D)


def _pick_bt(b, lp, d, itemsize, target_rows=256, budget_bytes=4 * 1024 * 1024):
    """Batch elements folded into the MXU M dim per step (Bt*Lp ~ target_rows)."""
    bt = max(1, min(b, max(1, target_rows // lp)))
    while bt > 1 and 2 * bt * lp * d * itemsize > budget_bytes:
        bt -= 1
    return bt


def global_text_presentation(fea_text, w_txt, b_txt, mask=None, *,
                             tile_d=None, target_rows=256,
                             matmul_dtype=jnp.float32):
    """fea_text: (B, D, L); w_txt: (D, D) (PyTorch Linear weight, out x in);
    b_txt: (D,); mask: (B, 1, L) or None.  Returns (B, D, 1, 1) float32."""
    B, D, L = fea_text.shape
    Lp = ((L + 7) // 8) * 8                                   # sublane-align sequence

    x = jnp.transpose(fea_text, (0, 2, 1)).astype(matmul_dtype)   # (B, L, D)

    masked = (mask is not None) or (Lp != L)
    if masked:
        if mask is None:
            m = jnp.ones((B, L, 1), jnp.float32)
        else:
            m = jnp.transpose(mask, (0, 2, 1)).astype(jnp.float32)  # (B, L, 1)

    if Lp != L:                                               # pad L; pads masked out
        x = jnp.pad(x, ((0, 0), (0, Lp - L), (0, 0)))
        m = jnp.pad(m, ((0, 0), (0, Lp - L), (0, 0)))

    itemsize = jnp.dtype(matmul_dtype).itemsize
    if tile_d is None:
        tile_d = _pick_tile_d(D, itemsize)
    assert D % tile_d == 0, "tile_d must divide the hidden dim"
    assert tile_d == D or tile_d % 128 == 0, "tiled hidden dim must be lane aligned"
    num_tiles = D // tile_d

    bt = _pick_bt(B, Lp, D, itemsize, target_rows=target_rows)
    G = pl.cdiv(B, bt)
    Bp = G * bt
    if Bp != B:                                               # pad batch (zeros; dropped)
        x = jnp.pad(x, ((0, Bp - B), (0, 0), (0, 0)))
        if masked:
            m = jnp.pad(m, ((0, Bp - B), (0, 0), (0, 0)))

    wt = jnp.transpose(w_txt).astype(matmul_dtype)            # (D_in, D_out)
    b2d = b_txt.reshape(1, D).astype(jnp.float32)

    kernel = functools.partial(_global_text_kernel, bt=bt, lp=Lp,
                               tile_d=tile_d, num_tiles=num_tiles, masked=masked)

    in_specs = [pl.BlockSpec((bt, Lp, D), lambda j, g: (g, 0, 0))]      # activations
    operands = [x]
    if masked:
        in_specs.append(pl.BlockSpec((bt, Lp, 1), lambda j, g: (g, 0, 0)))
        operands.append(m)
    in_specs += [
        pl.BlockSpec((D, tile_d), lambda j, g: (0, j)),       # W^T tile: constant over g
        pl.BlockSpec((1, tile_d), lambda j, g: (0, j)),       # bias tile
    ]
    operands += [wt, b2d]

    out = pl.pallas_call(
        kernel,
        out_shape=jax.ShapeDtypeStruct((G, bt, D), jnp.float32),
        grid_spec=pltpu.PrefetchScalarGridSpec(
            num_scalar_prefetch=0,
            grid=(num_tiles, G),                              # tile axis OUTER
            in_specs=in_specs,
            out_specs=pl.BlockSpec((1, bt, tile_d), lambda j, g: (g, 0, j)),
        ),
        compiler_params=pltpu.CompilerParams(
            dimension_semantics=("parallel", "parallel")),
    )(*operands)

    out = out.reshape(Bp, D)[:B]                              # (B, D)
    return out.reshape(B, D, 1, 1)                            # free metadata reshape


def global_text_presentation_reference(fea_text, w_txt, b_txt, mask=None):
    x = jnp.transpose(fea_text, (0, 2, 1))                    # (B, L, D)
    w = jnp.einsum("bld,od->blo", x, w_txt) + b_txt           # Linear: x @ W.T + b
    if mask is not None:
        m = jnp.transpose(mask, (0, 2, 1))                    # (B, L, 1)
        w = jnp.where(m == 0, -1e9, w)
    w = jax.nn.softmax(w, axis=1)                             # over L
    g = jnp.sum(x * w, axis=1, keepdims=True)                 # (B, 1, D)
    return jnp.transpose(g, (0, 2, 1))[..., None]             # (B, D, 1, 1)


if __name__ == "__main__":
    # Shapes consistent with the module: text_dim=256, seq_len=12, batch=2.
    B, D, L = 2, 256, 12

    key = jax.random.PRNGKey(0)
    k1, k2, k3 = jax.random.split(key, 3)
    fea_text = jax.random.normal(k1, (B, D, L), jnp.float32)
    w_txt = 0.1 * jax.random.normal(k2, (D, D), jnp.float32)  # nn.Linear weight (D_out, D_in)
    b_txt = 0.1 * jax.random.normal(k3, (D,), jnp.float32)
    # Padding mask (B, 1, L): mask out the last 3 tokens of batch element 1.
    mask = jnp.ones((B, 1, L), jnp.float32).at[1, 0, 9:].set(0.0)

    # 1) Masked path, resident W^T (num_tiles == 1), batched-M matmul, f32.
    fwd = jax.jit(global_text_presentation)
    out = fwd(fea_text, w_txt, b_txt, mask)
    jax.block_until_ready(out)
    out_ref = global_text_presentation_reference(fea_text, w_txt, b_txt, mask)
    assert out.shape == (B, D, 1, 1)
    assert jnp.allclose(out, out_ref, atol=1e-4, rtol=1e-4)

    # 2) Masked path with a forced hidden-dim tiling (exercises the j-outer grid
    #    and the lane-sliced weighted sum).
    fwd_tiled = jax.jit(functools.partial(global_text_presentation, tile_d=128))
    out_t = fwd_tiled(fea_text, w_txt, b_txt, mask)
    jax.block_until_ready(out_t)
    assert jnp.allclose(out_t, out_ref, atol=1e-4, rtol=1e-4)

    # 3) No-mask path with L already a multiple of 8 -> static no-mask kernel
    #    (no mask DMA, no select).
    L16 = 16
    fea_text16 = jax.random.normal(jax.random.PRNGKey(1), (B, D, L16), jnp.float32)
    out_nm = jax.jit(global_text_presentation)(fea_text16, w_txt, b_txt, None)
    jax.block_until_ready(out_nm)
    out_nm_ref = global_text_presentation_reference(fea_text16, w_txt, b_txt, None)
    assert jnp.allclose(out_nm, out_nm_ref, atol=1e-4, rtol=1e-4)

    # 4) bf16 matmul inputs (v6e/v7x-friendly): halves W^T traffic, f32 accumulate.
    fwd_bf16 = jax.jit(functools.partial(global_text_presentation,
                                         matmul_dtype=jnp.bfloat16))
    out_bf16 = fwd_bf16(fea_text, w_txt, b_txt, mask)
    jax.block_until_ready(out_bf16)
    assert jnp.allclose(out_bf16, out_ref, atol=2e-2, rtol=2e-2)

    print("KERNEL_OK")
</pallas_src>

<mosaic_0001>
module attributes {stable_mosaic.version = 11 : i64} {
  func.func @_global_text_kernel(%arg0: i32, %arg1: i32, %arg2: memref<2x16x256xf32, #tpu.memory_space<vmem>>, %arg3: memref<2x16x1xf32, #tpu.memory_space<vmem>>, %arg4: memref<256x256xf32, #tpu.memory_space<vmem>>, %arg5: memref<1x256xf32, #tpu.memory_space<vmem>>, %arg6: memref<1x2x256xf32, #tpu.memory_space<vmem>>) attributes {dimension_semantics = [#tpu.dimension_semantics<parallel>, #tpu.dimension_semantics<parallel>], iteration_bounds = array<i64: 1, 1>, scalar_prefetch = 0 : i64, scratch_operands = 0 : i64, tpu.core_type = #tpu.core_type<tc>, window_params = [{transform_indices = @transform_0, window_bounds = array<i64: 2, 16, 256>}, {transform_indices = @transform_1, window_bounds = array<i64: 2, 16, 1>}, {transform_indices = @transform_2, window_bounds = array<i64: 256, 256>}, {transform_indices = @transform_3, window_bounds = array<i64: 1, 256>}, {transform_indices = @transform_4, window_bounds = array<i64: 1, 2, 256>}]} {
    %c0 = arith.constant 0 : index
    %c0_0 = arith.constant 0 : index
    %c0_1 = arith.constant 0 : index
    %0 = vector.load %arg2[%c0, %c0_0, %c0_1] : memref<2x16x256xf32, #tpu.memory_space<vmem>>, vector<2x16x256xf32>
    %1 = vector.shape_cast %0 : vector<2x16x256xf32> to vector<32x256xf32>
    %c0_2 = arith.constant 0 : index
    %c0_3 = arith.constant 0 : index
    %2 = vector.load %arg4[%c0_2, %c0_3] : memref<256x256xf32, #tpu.memory_space<vmem>>, vector<256x256xf32>
    %cst = arith.constant dense<0.000000e+00> : vector<32x256xf32>
    %3 = tpu.matmul %1, %2, %cst {dimension_numbers = #tpu.dot_dimension_numbers<[1], [0], [0], [1], [0, 0, 1, 1], [], []>} : vector<32x256xf32>, vector<256x256xf32>, vector<32x256xf32> -> vector<32x256xf32>
    %c0_4 = arith.constant 0 : index
    %c0_5 = arith.constant 0 : index
    %4 = vector.load %arg5[%c0_4, %c0_5] : memref<1x256xf32, #tpu.memory_space<vmem>>, vector<1x256xf32>
    %5 = vector.broadcast %4 : vector<1x256xf32> to vector<32x256xf32>
    %6 = arith.addf %3, %5 : vector<32x256xf32>
    %7 = vector.shape_cast %6 : vector<32x256xf32> to vector<2x16x256xf32>
    %c0_6 = arith.constant 0 : index
    %c0_7 = arith.constant 0 : index
    %c0_8 = arith.constant 0 : index
    %8 = vector.load %arg3[%c0_6, %c0_7, %c0_8] : memref<2x16x1xf32, #tpu.memory_space<vmem>>, vector<2x16x1xf32>
    %cst_9 = arith.constant 0.000000e+00 : f32
    %9 = vector.broadcast %cst_9 : f32 to vector<2x16x1xf32>
    %10 = arith.cmpf oeq, %8, %9 : vector<2x16x1xf32>
    %cst_10 = arith.constant -1.000000e+09 : f32
    %11 = vector.shape_cast %10 : vector<2x16x1xi1> to vector<2x16x1xi1>
    %12 = vector.broadcast %11 : vector<2x16x1xi1> to vector<2x16x256xi1>
    %13 = vector.broadcast %cst_10 : f32 to vector<2x16x256xf32>
    %14 = arith.select %12, %13, %7 : vector<2x16x256xi1>, vector<2x16x256xf32>
    %cst_11 = arith.constant dense<0xFF800000> : vector<2x256xf32>
    %15 = vector.multi_reduction <maximumf>, %14, %cst_11 [1] : vector<2x16x256xf32> to vector<2x256xf32>
    %16 = vector.shape_cast %15 : vector<2x256xf32> to vector<2x1x256xf32>
    %17 = vector.broadcast %16 : vector<2x1x256xf32> to vector<2x16x256xf32>
    %18 = arith.subf %14, %17 : vector<2x16x256xf32>
    %19 = math.exp %18 : vector<2x16x256xf32>
    %cst_12 = arith.constant dense<0.000000e+00> : vector<2x256xf32>
    %20 = vector.multi_reduction <add>, %19, %cst_12 [1] : vector<2x16x256xf32> to vector<2x256xf32>
    %21 = arith.mulf %0, %19 : vector<2x16x256xf32>
    %cst_13 = arith.constant dense<0.000000e+00> : vector<2x256xf32>
    %22 = vector.multi_reduction <add>, %21, %cst_13 [1] : vector<2x16x256xf32> to vector<2x256xf32>
    %23 = arith.divf %22, %20 : vector<2x256xf32>
    %c0_14 = arith.constant 0 : index
    %c0_15 = arith.constant 0 : index
    %c0_16 = arith.constant 0 : index
    %24 = vector.load %arg6[%c0_14, %c0_15, %c0_16] : memref<1x2x256xf32, #tpu.memory_space<vmem>>, vector<1x2x256xf32>
    %25 = vector.shape_cast %24 : vector<1x2x256xf32> to vector<2x256xf32>
    %26 = vector.shape_cast %23 : vector<2x256xf32> to vector<1x2x256xf32>
    tpu.vector_store %arg6[%c0_14, %c0_15, %c0_16], %26 {strides = array<i32>} : memref<1x2x256xf32, #tpu.memory_space<vmem>>, vector<1x2x256xf32>,
    return
  }
  func.func @transform_0(%arg0: i32, %arg1: i32) -> (i32, i32, i32) {
    %c0_i32 = arith.constant 0 : i32
    %c0_i32_0 = arith.constant 0 : i32
    %c0_i32_1 = arith.constant 0 : i32
    return %arg1, %c0_i32, %c0_i32_0 : i32, i32, i32
  }
  func.func @transform_1(%arg0: i32, %arg1: i32) -> (i32, i32, i32) {
    %c0_i32 = arith.constant 0 : i32
    %c0_i32_0 = arith.constant 0 : i32
    %c0_i32_1 = arith.constant 0 : i32
    return %arg1, %c0_i32, %c0_i32_0 : i32, i32, i32
  }
  func.func @transform_2(%arg0: i32, %arg1: i32) -> (i32, i32) {
    %c0_i32 = arith.constant 0 : i32
    %c0_i32_0 = arith.constant 0 : i32
    return %c0_i32, %arg0 : i32, i32
  }
  func.func @transform_3(%arg0: i32, %arg1: i32) -> (i32, i32) {
    %c0_i32 = arith.constant 0 : i32
    %c0_i32_0 = arith.constant 0 : i32
    return %c0_i32, %arg0 : i32, i32
  }
  func.func @transform_4(%arg0: i32, %arg1: i32) -> (i32, i32, i32) {
    %c0_i32 = arith.constant 0 : i32
    %c0_i32_0 = arith.constant 0 : i32
    return %arg1, %c0_i32, %arg0 : i32, i32, i32
  }
}

</mosaic_0001>

<bundles_post_ra>
// kernel: global_text_presentation.1
= control target key start
LH: loop header
LB: loop body
LE: loop exit
PB: predicated region body
PF: predicated region fallthrough
CT: control target
= control target key end

     0   :  { %v513_v3 = vmov 0   ;;  %vm375_vm8 = vcmask 1041409   ;;  %vm377_vm9 = vcmask 1043459   ;;  %vm379_vm10 = vcmask 1045509   ;;  %s821_s2 = inlined_call_operand.vmem [shape: f32[256,256], index: 2, kind: input, shape index: {}]   ;;  %s822_s0 = inlined_call_operand.vmem [shape: f32[2,16,256], index: 0, kind: input, shape index: {}]   ;;  %s823_s1 = inlined_call_operand.vmem [shape: f32[2,16,1], index: 1, kind: input, shape index: {}]   ;;  %s824_s3 = inlined_call_operand.vmem [shape: f32[1,256], index: 3, kind: input, shape index: {}]   ;;  %s825_s4 = inlined_call_operand.vmem [shape: f32[1,2,256], index: 4, kind: output, shape index: {}]  }
   0x1   :  { %v26_v0 = vld [vmem:[%s821_s2 + $0x8] sm:$0xff]  ;;  %v28_v1 = vld [vmem:[%s821_s2 + $0x18] sm:$0xff]  ;;  %v25_v2 = vld [vmem:[%s821_s2] sm:$0xff]  ;;  %487 = vset.pattern.permute.xlu0 %v513_v3  ;;  %488 = vset.pattern.permute.xlu1 %v513_v3  ;;  %vm381_vm11 = vcmask 1047559  }
   0x2   :  { %v389_v4 = vpack.c.bf16 %v28_v1, %v26_v0  ;;  %v27_v5 = vld [vmem:[%s821_s2 + $0x10] sm:$0xff]  ;;  %v30_v6 = vld [vmem:[%s821_s2 + $0x28] sm:$0xff]  ;;  %v32_v7 = vld [vmem:[%s821_s2 + $0x38] sm:$0xff] }
   0x3   :  { %v391_v8 = vpack.c.bf16 %v27_v5, %v25_v2  ;;  %v393_v9 = vpack.c.bf16 %v32_v7, %v30_v6  ;;  %v29_v10 = vld [vmem:[%s821_s2 + $0x20] sm:$0xff]  ;;  %v31_v11 = vld [vmem:[%s821_s2 + $0x30] sm:$0xff]  ;;  %v34_v12 = vld [vmem:[%s821_s2 + $0x48] sm:$0xff] }
   0x4   :  { %390 = vmatprep.subr.bf16.mxu0 %v389_v4  ;;  %453 = vmatprep.subr.bf16.mxu1 %v389_v4  ;;  %v36_v13 = vld [vmem:[%s821_s2 + $0x58] sm:$0xff]  ;;  %v395_v14 = vpack.c.bf16 %v31_v11, %v29_v10  ;;  %v33_v16 = vld [vmem:[%s821_s2 + $0x40] sm:$0xff]  ;;  %v35_v17 = vld [vmem:[%s821_s2 + $0x50] sm:$0xff] }
   0x5   :  { %392 = vmatpush1.bf16.msra.mxu0 %v391_v8  ;;  %469 = vmatpush1.bf16.msra.mxu1 %v391_v8  ;;  %v397_v15 = vpack.c.bf16 %v36_v13, %v34_v12  ;;  %v38_v18 = vld [vmem:[%s821_s2 + $0x68] sm:$0xff]  ;;  %v40_v19 = vld [vmem:[%s821_s2 + $0x78] sm:$0xff]  ;;  %v399_v20 = vpack.c.bf16 %v35_v17, %v33_v16  ;;  %v37_v22 = vld [vmem:[%s821_s2 + $0x60] sm:$0xff] }
   0x6   :  { %394 = vmatprep.subr.bf16.mxu0 %v393_v9  ;;  %454 = vmatprep.subr.bf16.mxu1 %v393_v9  ;;  %v401_v21 = vpack.c.bf16 %v40_v19, %v38_v18  ;;  %v39_v23 = vld [vmem:[%s821_s2 + $0x70] sm:$0xff]  ;;  %v42_v24 = vld [vmem:[%s821_s2 + $0x88] sm:$0xff]  ;;  %v44_v25 = vld [vmem:[%s821_s2 + $0x98] sm:$0xff] }
   0x7   :  { %v403_v26 = vpack.c.bf16 %v39_v23, %v37_v22  ;;  %v405_v27 = vpack.c.bf16 %v44_v25, %v42_v24  ;;  %v41_v28 = vld [vmem:[%s821_s2 + $0x80] sm:$0xff]  ;;  %v43_v29 = vld [vmem:[%s821_s2 + $0x90] sm:$0xff]  ;;  %v46_v30 = vld [vmem:[%s821_s2 + $0xa8] sm:$0xff] }
   0x8   :  { %v48_v31 = vld [vmem:[%s821_s2 + $0xb8] sm:$0xff]  ;;  %v407_v32 = vpack.c.bf16 %v43_v29, %v41_v28  ;;  %v45_v34 = vld [vmem:[%s821_s2 + $0xa0] sm:$0xff]  ;;  %v47_v35 = vld [vmem:[%s821_s2 + $0xb0] sm:$0xff] }
   0x9   :  { %396 = vmatpush1.bf16.msra.mxu0 %v395_v14  ;;  %470 = vmatpush1.bf16.msra.mxu1 %v395_v14  ;;  %v409_v33 = vpack.c.bf16 %v48_v31, %v46_v30  ;;  %v50_v36 = vld [vmem:[%s821_s2 + $0xc8] sm:$0xff]  ;;  %v52_v37 = vld [vmem:[%s821_s2 + $0xd8] sm:$0xff]  ;;  %v411_v38 = vpack.c.bf16 %v47_v35, %v45_v34  ;;  %v49_v39 = vld [vmem:[%s821_s2 + $0xc0] sm:$0xff] }
   0xa   :  { %398 = vmatprep.subr.bf16.mxu0 %v397_v15  ;;  %455 = vmatprep.subr.bf16.mxu1 %v397_v15  ;;  %v413_v40 = vpack.c.bf16 %v52_v37, %v50_v36  ;;  %v51_v41 = vld [vmem:[%s821_s2 + $0xd0] sm:$0xff]  ;;  %v629_v42 = vld [vmem:[%s822_s0 + $0x8] sm:$0xff]  ;;  %v56_v45 = vld [vmem:[%s821_s2 + $0xf8] sm:$0xff] }
   0xb   :  { %v634_v43 = vld [vmem:[%s822_s0 + $0x28] sm:$0xff]  ;;  %165 = vmatprep.mubr.f32.mxu0 %v629_v42  ;;  %v415_v46 = vpack.c.bf16 %v51_v41, %v49_v39  ;;  %v192_v47 = vld [vmem:[%s823_s1 + $0x10] sm:$0xff]  ;;  %v190_v48 = vld [vmem:[%s823_s1] sm:$0xff] }
   0xc   :  { %v54_v44 = vld [vmem:[%s821_s2 + $0xe8] sm:$0xff]  ;;  %177 = vmatprep.mubr.f32.mxu1 %v634_v43  ;;  %v193_v49 = vld [vmem:[%s823_s1 + $0x18] sm:$0xff]  ;;  %v53_v51 = vld [vmem:[%s821_s2 + $0xe0] sm:$0xff]  ;;  %vm196_vm0 = vcmp.eq.f32.partialorder %v192_v47, 0.0  ;;  %vm194_vm1 = vcmp.eq.f32.partialorder %v190_v48, 0.0 }
   0xd   :  { %400 = vmatpush1.bf16.msra.mxu0 %v399_v20  ;;  %471 = vmatpush1.bf16.msra.mxu1 %v399_v20  ;;  %v417_v50 = vpack.c.bf16 %v56_v45, %v54_v44  ;;  %v55_v52 = vld [vmem:[%s821_s2 + $0xf0] sm:$0xff]  ;;  %vm197_vm2 = vcmp.eq.f32.partialorder %v193_v49, 0.0  ;;  %v191_v53 = vld [vmem:[%s823_s1 + $0x8] sm:$0xff]  ;;  %v60_v55 = vld [vmem:[%s821_s2 + $0x118] sm:$0xff]  ;;  %v200_v56 = vsel %vm196_vm0, 1, %v513_v3  ;;  %v198_v57 = vsel %vm194_vm1, 1, %v513_v3 }
   0xe   :  { %402 = vmatprep.subr.bf16.mxu0 %v401_v21  ;;  %456 = vmatprep.subr.bf16.mxu1 %v401_v21  ;;  %v58_v54 = vld [vmem:[%s821_s2 + $0x108] sm:$0xff]  ;;  %vm195_vm3 = vcmp.eq.f32.partialorder %v191_v53, 0.0  ;;  %v419_v58 = vpack.c.bf16 %v55_v52, %v53_v51  ;;  %v201_v59 = vsel %vm197_vm2, 1, %v513_v3  ;;  %v57_v62 = vld [vmem:[%s821_s2 + $0x100] sm:$0xff]  ;;  %v59_v63 = vld [vmem:[%s821_s2 + $0x110] sm:$0xff]  ;;  %v91_v51 = vlaneseq }
   0xf   :  { %209 = vperm.xlu0 %487, %v200_v56   ;;  %203 = vperm.xlu1 %488, %v198_v57   ;;  %v199_v60 = vsel %vm195_vm3, 1, %v513_v3  ;;  %v421_v61 = vpack.c.bf16 %v60_v55, %v58_v54  ;;  %v62_v0 = vld [vmem:[%s821_s2 + $0x128] sm:$0xff]  ;;  %v64_v1 = vld [vmem:[%s821_s2 + $0x138] sm:$0xff]  ;;  %v423_v2 = vpack.c.bf16 %v59_v63, %v57_v62  ;;  %v61_v4 = vld [vmem:[%s821_s2 + $0x120] sm:$0xff] }
  0x10   :  { %v425_v3 = vpack.c.bf16 %v64_v1, %v62_v0  ;;  %v63_v5 = vld [vmem:[%s821_s2 + $0x130] sm:$0xff]  ;;  %v66_v6 = vld [vmem:[%s821_s2 + $0x148] sm:$0xff]  ;;  %v68_v7 = vld [vmem:[%s821_s2 + $0x158] sm:$0xff]  ;;  %v798_v52 = vshrl.u32 %v91_v51, 7 }
  0x11   :  { %404 = vmatpush1.bf16.msra.mxu0 %v403_v26  ;;  %472 = vmatpush1.bf16.msra.mxu1 %v403_v26  ;;  %v427_v8 = vpack.c.bf16 %v63_v5, %v61_v4  ;;  %v429_v9 = vpack.c.bf16 %v68_v7, %v66_v6  ;;  %v65_v10 = vld [vmem:[%s821_s2 + $0x140] sm:$0xff]  ;;  %v67_v11 = vld [vmem:[%s821_s2 + $0x150] sm:$0xff]  ;;  %v70_v12 = vld [vmem:[%s821_s2 + $0x168] sm:$0xff] }
  0x12   :  { %406 = vmatprep.subr.bf16.mxu0 %v405_v27  ;;  %457 = vmatprep.subr.bf16.mxu1 %v405_v27  ;;  %v72_v13 = vld [vmem:[%s821_s2 + $0x178] sm:$0xff]  ;;  %v431_v14 = vpack.c.bf16 %v67_v11, %v65_v10  ;;  %v69_v16 = vld [vmem:[%s821_s2 + $0x160] sm:$0xff]  ;;  %v71_v17 = vld [vmem:[%s821_s2 + $0x170] sm:$0xff]  ;;  %v93_v54 = vsub.s32 0, %v798_v52  ;;  %v97_v56 = vsub.s32 1, %v798_v52 }
  0x13   :  { %212 = vperm.xlu0 %487, %v201_v59   ;;  %206 = vperm.xlu1 %488, %v199_v60   ;;  %v433_v15 = vpack.c.bf16 %v72_v13, %v70_v12  ;;  %v74_v18 = vld [vmem:[%s821_s2 + $0x188] sm:$0xff]  ;;  %v76_v19 = vld [vmem:[%s821_s2 + $0x198] sm:$0xff]  ;;  %v435_v20 = vpack.c.bf16 %v71_v17, %v69_v16  ;;  %v73_v22 = vld [vmem:[%s821_s2 + $0x180] sm:$0xff] }
  0x14   :  { %v437_v21 = vpack.c.bf16 %v76_v19, %v74_v18  ;;  %v75_v23 = vld [vmem:[%s821_s2 + $0x190] sm:$0xff]  ;;  %v78_v24 = vld [vmem:[%s821_s2 + $0x1a8] sm:$0xff]  ;;  %v80_v25 = vld [vmem:[%s821_s2 + $0x1b8] sm:$0xff] }
  0x15   :  { %408 = vmatpush1.bf16.msra.mxu0 %v407_v32  ;;  %473 = vmatpush1.bf16.msra.mxu1 %v407_v32  ;;  %v439_v26 = vpack.c.bf16 %v75_v23, %v73_v22  ;;  %v441_v27 = vpack.c.bf16 %v80_v25, %v78_v24  ;;  %v77_v28 = vld [vmem:[%s821_s2 + $0x1a0] sm:$0xff]  ;;  %v79_v29 = vld [vmem:[%s821_s2 + $0x1b0] sm:$0xff]  ;;  %v82_v30 = vld [vmem:[%s821_s2 + $0x1c8] sm:$0xff] }
  0x16   :  { %410 = vmatprep.subr.bf16.mxu0 %v409_v33  ;;  %458 = vmatprep.subr.bf16.mxu1 %v409_v33  ;;  %v84_v31 = vld [vmem:[%s821_s2 + $0x1d8] sm:$0xff]  ;;  %v443_v32 = vpack.c.bf16 %v79_v29, %v77_v28  ;;  %v81_v34 = vld [vmem:[%s821_s2 + $0x1c0] sm:$0xff]  ;;  %v83_v35 = vld [vmem:[%s821_s2 + $0x1d0] sm:$0xff] }
  0x17   :  { %v445_v33 = vpack.c.bf16 %v84_v31, %v82_v30  ;;  %v86_v36 = vld [vmem:[%s821_s2 + $0x1e8] sm:$0xff]  ;;  %v88_v37 = vld [vmem:[%s821_s2 + $0x1f8] sm:$0xff]  ;;  %v87_v41 = vld [vmem:[%s821_s2 + $0x1f0] sm:$0xff] }
  0x18   :  { %v449_v39 = vpack.c.bf16 %v88_v37, %v86_v36  ;;  %v765_v45 = vld [vmem:[%s822_s0] sm:$0xff]  ;;  %v775_v47 = vld [vmem:[%s822_s0 + $0x18] sm:$0xff]  ;;  %v789_v49 = vld [vmem:[%s822_s0 + $0x10] sm:$0xff] }
  0x19   :  { %412 = vmatpush1.bf16.msra.mxu0 %v411_v38  ;;  %474 = vmatpush1.bf16.msra.mxu1 %v411_v38  ;;  %v447_v38 = vpack.c.bf16 %v83_v35, %v81_v34  ;;  %v780_v48 = vld [vmem:[%s822_s0 + $0x38] sm:$0xff]  ;;  %v89_v55 = vld [vmem:[%s824_s3] sm:$0x3] }
  0x1a   :  { %414 = vmatprep.subr.bf16.mxu0 %v413_v40  ;;  %459 = vmatprep.subr.bf16.mxu1 %v413_v40  ;;  %v85_v40 = vld [vmem:[%s821_s2 + $0x1e0] sm:$0xff]  ;;  %v98_v59 = vrot.slane %v89_v55, %v97_v56 }
  0x1b   :  { %v451_v44 = vpack.c.bf16 %v87_v41, %v85_v40 }
  0x1d   :  { %416 = vmatpush1.bf16.msra.mxu0 %v415_v46  ;;  %475 = vmatpush1.bf16.msra.mxu1 %v415_v46  ;;  %v770_v46 = vld [vmem:[%s822_s0 + $0x20] sm:$0xff] }
  0x1e   :  { %418 = vmatprep.subr.bf16.mxu0 %v417_v50  ;;  %460 = vmatprep.subr.bf16.mxu1 %v417_v50  ;;  %v794_v50 = vld [vmem:[%s822_s0 + $0x30] sm:$0xff] }
  0x21   :  { %420 = vmatpush1.bf16.msra.mxu0 %v419_v58  ;;  %476 = vmatpush1.bf16.msra.mxu1 %v419_v58  ;;  %v94_v58 = vrot.slane %v89_v55, %v93_v54 }
  0x22   :  { %422 = vmatprep.subr.bf16.mxu0 %v421_v61  ;;  %461 = vmatprep.subr.bf16.mxu1 %v421_v61 }
  0x25   :  { %424 = vmatpush1.bf16.msra.mxu0 %v423_v2  ;;  %477 = vmatpush1.bf16.msra.mxu1 %v423_v2 }
  0x26   :  { %426 = vmatprep.subr.bf16.mxu0 %v425_v3  ;;  %462 = vmatprep.subr.bf16.mxu1 %v425_v3 }
  0x29   :  { %428 = vmatpush1.bf16.msra.mxu0 %v427_v8  ;;  %478 = vmatpush1.bf16.msra.mxu1 %v427_v8 }
  0x2a   :  { %430 = vmatprep.subr.bf16.mxu0 %v429_v9  ;;  %463 = vmatprep.subr.bf16.mxu1 %v429_v9 }
  0x2d   :  { %432 = vmatpush1.bf16.msra.mxu0 %v431_v14  ;;  %479 = vmatpush1.bf16.msra.mxu1 %v431_v14 }
  0x2e   :  { %434 = vmatprep.subr.bf16.mxu0 %v433_v15  ;;  %464 = vmatprep.subr.bf16.mxu1 %v433_v15 }
  0x31   :  { %436 = vmatpush1.bf16.msra.mxu0 %v435_v20  ;;  %480 = vmatpush1.bf16.msra.mxu1 %v435_v20 }
  0x32   :  { %438 = vmatprep.subr.bf16.mxu0 %v437_v21  ;;  %465 = vmatprep.subr.bf16.mxu1 %v437_v21 }
  0x35   :  { %440 = vmatpush1.bf16.msra.mxu0 %v439_v26  ;;  %481 = vmatpush1.bf16.msra.mxu1 %v439_v26 }
  0x36   :  { %442 = vmatprep.subr.bf16.mxu0 %v441_v27  ;;  %466 = vmatprep.subr.bf16.mxu1 %v441_v27 }
  0x39   :  { %444 = vmatpush1.bf16.msra.mxu0 %v443_v32  ;;  %482 = vmatpush1.bf16.msra.mxu1 %v443_v32 }
  0x3a   :  { %446 = vmatprep.subr.bf16.mxu0 %v445_v33  ;;  %467 = vmatprep.subr.bf16.mxu1 %v445_v33 }
  0x3d   :  { %448 = vmatpush1.bf16.msra.mxu0 %v447_v38  ;;  %483 = vmatpush1.bf16.msra.mxu1 %v447_v38 }
  0x3e   :  { %450 = vmatprep.subr.bf16.mxu0 %v449_v39  ;;  %468 = vmatprep.subr.bf16.mxu1 %v449_v39 }
  0x41   :  { %452 = vmatpush1.bf16.msra.mxu0 %v451_v44  ;;  %484 = vmatpush1.bf16.msra.mxu1 %v451_v44 }
  0x44   :  { %166 = vmatmul.mubr.f32.vlgmr.msra.gmra.mrb[0].mxu0 %v765_v45  ;;  %178 = vmatmul.mubr.f32.vlgmr.msra.gmra.mrb[0].mxu1 %v770_v46 }
  0x45   :  { %171 = vmatprep.mubr.f32.mxu0 %v775_v47  ;;  %183 = vmatprep.mubr.f32.mxu1 %v780_v48 }
  0x48   :  { %172 = vmatmul.mubr.f32.gmra.mrb[2].mxu0 %v789_v49  ;;  %184 = vmatmul.mubr.f32.gmra.mrb[2].mxu1 %v794_v50 }
  0x8e   :  { %v204_v53 = vpop.permute.xlu1 %203  ;;  %v210_v57 = vpop.permute.xlu0 %209 }
  0x8f   :  { %vm216_vm4 = vcmp.eq.s32.totalorder %v210_v57, 1  ;;  %vm214_vm5 = vcmp.eq.s32.totalorder %v204_v53, 1 }
  0x92   :  { %v207_v60 = vpop.permute.xlu1 %206  ;;  %v213_v4 = vpop.permute.xlu0 %212 }
  0x93   :  { %vm215_vm6 = vcmp.eq.s32.totalorder %v207_v60, 1  ;;  %vm217_vm7 = vcmp.eq.s32.totalorder %v213_v4, 1 }
 0x117   :  { %v179_v61 = vpop.f32.mrb[0].mxu1  ;;  %v167_v62 = vpop.f32.mrb[0].mxu0 }
 0x118   :  { %v180_v63 = vadd.f32 %v179_v61, %v94_v58  ;;  %v181_v0 = vpop.f32.mrb[1].mxu1  ;;  %v169_v1 = vpop.f32.mrb[1].mxu0  ;;  %v168_v2 = vadd.f32 %v167_v62, %v94_v58 }
 0x119   :  { %v182_v3 = vadd.f32 %v181_v0, %v98_v59  ;;  %v170_v5 = vadd.f32 %v169_v1, %v98_v59 }
 0x11a   :  { %v222_v8 = vsel %vm216_vm4, -1e+09, %v180_v63  ;;  %v218_v13 = vsel %vm214_vm5, -1e+09, %v168_v2 }
 0x11b   :  { %v173_v6 = vpop.f32.mrb[2].mxu0  ;;  %v185_v7 = vpop.f32.mrb[2].mxu1  ;;  %v223_v14 = vsel %vm216_vm4, -1e+09, %v182_v3  ;;  %v219_v17 = vsel %vm214_vm5, -1e+09, %v170_v5 }
 0x11c   :  { %v174_v9 = vadd.f32 %v173_v6, %v94_v58  ;;  %v186_v10 = vadd.f32 %v185_v7, %v94_v58  ;;  %v175_v11 = vpop.f32.mrb[3].mxu0  ;;  %v187_v12 = vpop.f32.mrb[3].mxu1 }
 0x11d   :  { %v176_v15 = vadd.f32 %v175_v11, %v98_v59  ;;  %v188_v16 = vadd.f32 %v187_v12, %v98_v59 }
 0x11e   :  { %v220_v18 = vsel %vm215_vm6, -1e+09, %v174_v9  ;;  %v224_v19 = vsel %vm217_vm7, -1e+09, %v186_v10 }
 0x11f   :  { %v226_v20 = vmax.f32 %v218_v13, %v220_v18  ;;  %v240_v21 = vmax.f32 %v222_v8, %v224_v19  ;;  %v221_v22 = vsel %vm215_vm6, -1e+09, %v176_v15  ;;  %v225_v23 = vsel %vm217_vm7, -1e+09, %v188_v16 }
 0x120   :  { %v233_v24 = vmax.f32 %v219_v17, %v221_v22  ;;  %v247_v25 = vmax.f32 %v223_v14, %v225_v23 }
 0x121   :  { %v227_v26 = vrot.slane %v226_v20, 4  ;;  %v241_v27 = vrot.slane %v240_v21, 4 }
 0x122   :  { %v234_v28 = vrot.slane %v233_v24, 4  ;;  %v248_v29 = vrot.slane %v247_v25, 4 }
 0x123   :  { %v228_v30 = vmax.f32 %v226_v20, %v227_v26  ;;  %v242_v31 = vmax.f32 %v240_v21, %v241_v27 }
 0x124   :  { %v235_v32 = vmax.f32 %v233_v24, %v234_v28  ;;  %v249_v33 = vmax.f32 %v247_v25, %v248_v29 }
 0x125   :  { %v229_v34 = vrot.slane %v228_v30, 2  ;;  %v243_v35 = vrot.slane %v242_v31, 2 }
 0x126   :  { %v236_v36 = vrot.slane %v235_v32, 2  ;;  %v250_v37 = vrot.slane %v249_v33, 2 }
 0x127   :  { %v230_v38 = vmax.f32 %v228_v30, %v229_v34  ;;  %v244_v39 = vmax.f32 %v242_v31, %v243_v35 }
 0x128   :  { %v237_v40 = vmax.f32 %v235_v32, %v236_v36  ;;  %v251_v41 = vmax.f32 %v249_v33, %v250_v37 }
 0x129   :  { %v231_v44 = vrot.slane %v230_v38, 1  ;;  %v245_v51 = vrot.slane %v244_v39, 1 }
 0x12a   :  { %v238_v53 = vrot.slane %v237_v40, 1  ;;  %v252_v54 = vrot.slane %v251_v41, 1 }
 0x12b   :  { %v232_v55 = vmax.f32 %v230_v38, %v231_v44  ;;  %v246_v56 = vmax.f32 %v244_v39, %v245_v51 }
 0x12c   :  { %v239_v57 = vmax.f32 %v237_v40, %v238_v53  ;;  %v253_v58 = vmax.f32 %v251_v41, %v252_v54 }
 0x12d   :  { %v254_v59 = vsub.f32 %v218_v13, %v232_v55  ;;  %v256_v60 = vsub.f32 %v220_v18, %v232_v55  ;;  %v258_v61 = vsub.f32 %v222_v8, %v246_v56  ;;  %v260_v62 = vsub.f32 %v224_v19, %v246_v56 }
 0x12e   :  { %v255_v63 = vsub.f32 %v219_v17, %v239_v57  ;;  %v257_v0 = vsub.f32 %v221_v22, %v239_v57  ;;  %v259_v1 = vsub.f32 %v223_v14, %v253_v58  ;;  %v261_v2 = vsub.f32 %v225_v23, %v253_v58 }
 0x12f   :  { %v262_v3 = vmul.f32 1.442695, %v254_v59  ;;  %v266_v4 = vmul.f32 1.442695, %v256_v60  ;;  %v270_v5 = vmul.f32 1.442695, %v258_v61 }
 0x130   :  { %v274_v6 = vmul.f32 1.442695, %v260_v62  ;;  %v264_v7 = vmul.f32 1.442695, %v255_v63  ;;  %v268_v9 = vmul.f32 1.442695, %v257_v0 }
 0x131   :  { %489 = vpow2.f32 %v262_v3  ;;  %v272_v10 = vmul.f32 1.442695, %v259_v1  ;;  %v276_v11 = vmul.f32 1.442695, %v261_v2 }
 0x132   :  { %491 = vpow2.f32 %v266_v4 }
 0x133   :  { %493 = vpow2.f32 %v270_v5 }
 0x134   :  { %495 = vpow2.f32 %v274_v6 }
 0x135   :  { %497 = vpow2.f32 %v264_v7 }
 0x136   :  { %499 = vpow2.f32 %v268_v9 }
 0x137   :  { %501 = vpow2.f32 %v272_v10 }
 0x138   :  { %503 = vpow2.f32 %v276_v11 }
 0x13b   :  { %v490_v8 = vpop.eup %489 }
 0x13c   :  { %v492_v12 = vpop.eup %491  ;;  %v306_v13 = vmul.f32 %v490_v8, %v765_v45 }
 0x13d   :  { %v494_v14 = vpop.eup %493  ;;  %v278_v15 = vadd.f32 %v492_v12, %v490_v8  ;;  %v308_v16 = vmul.f32 %v492_v12, %v789_v49 }
 0x13e   :  { %v496_v17 = vpop.eup %495  ;;  %v310_v18 = vmul.f32 %v494_v14, %v770_v46 }
 0x13f   :  { %v498_v19 = vpop.eup %497  ;;  %v279_v20 = vrot.slane %v278_v15, 4  ;;  %v314_v21 = vadd.f32 %v308_v16, %v306_v13  ;;  %v292_v22 = vadd.f32 %v496_v17, %v494_v14  ;;  %v312_v23 = vmul.f32 %v496_v17, %v794_v50 }
 0x140   :  { %v500_v24 = vpop.eup %499  ;;  %v307_v25 = vmul.f32 %v498_v19, %v629_v42  ;;  %v514_v13 = vmov 1983009808  }
 0x141   :  { %v502_v26 = vpop.eup %501  ;;  %v280_v27 = vadd.f32 %v279_v20, %v278_v15  ;;  %v315_v28 = vrot.slane %v314_v21, 4  ;;  %v293_v45 = vrot.slane %v292_v22, 4  ;;  %v328_v29 = vadd.f32 %v312_v23, %v310_v18 }
 0x142   :  { %v504_v30 = vpop.eup %503  ;;  %v285_v31 = vadd.f32 %v500_v24, %v498_v19  ;;  %v309_v49 = vmul.f32 %v500_v24, %v775_v47  ;;  %v311_v46 = vmul.f32 %v502_v26, %v634_v43  ;;  %v356_v14 = vunpack.c.l.s4 %v514_v13 }
 0x143   :  { %v281_v32 = vrot.slane %v280_v27, 2  ;;  %v316_v33 = vadd.f32 %v315_v28, %v314_v21  ;;  %v294_v34 = vadd.f32 %v293_v45, %v292_v22  ;;  %v329_v35 = vrot.slane %v328_v29, 4 }
 0x144   :  { %v286_v36 = vrot.slane %v285_v31, 4  ;;  %v321_v50 = vadd.f32 %v309_v49, %v307_v25  ;;  %v299_v37 = vadd.f32 %v504_v30, %v502_v26  ;;  %v313_v42 = vmul.f32 %v504_v30, %v780_v48 }
 0x145   :  { %v282_v38 = vadd.f32 %v281_v32, %v280_v27  ;;  %v295_v39 = vrot.slane %v294_v34, 2  ;;  %v330_v40 = vadd.f32 %v329_v35, %v328_v29  ;;  %v317_v55 = vrot.slane %v316_v33, 2 }
 0x146   :  { %v287_v41 = vadd.f32 %v286_v36, %v285_v31  ;;  %v322_v44 = vrot.slane %v321_v50, 4  ;;  %v300_v51 = vrot.slane %v299_v37, 4  ;;  %v335_v53 = vadd.f32 %v313_v42, %v311_v46 }
 0x147   :  { %v283_v54 = vrot.slane %v282_v38, 1  ;;  %v296_v47 = vadd.f32 %v295_v39, %v294_v34  ;;  %v331_v61 = vrot.slane %v330_v40, 2  ;;  %v318_v1 = vadd.f32 %v317_v55, %v316_v33 }
 0x148   :  { %v288_v43 = vrot.slane %v287_v41, 2  ;;  %v301_v56 = vadd.f32 %v300_v51, %v299_v37  ;;  %v336_v57 = vrot.slane %v335_v53, 4  ;;  %v323_v60 = vadd.f32 %v322_v44, %v321_v50 }
 0x149   :  { %v284_v58 = vadd.f32 %v283_v54, %v282_v38  ;;  %v297_v59 = vrot.slane %v296_v47, 1  ;;  %v332_v5 = vadd.f32 %v331_v61, %v330_v40  ;;  %v319_v10 = vrot.slane %v318_v1, 1 }
 0x14a   :  { %v289_v62 = vadd.f32 %v288_v43, %v287_v41  ;;  %v302_v63 = vrot.slane %v301_v56, 2  ;;  %v337_v0 = vadd.f32 %v336_v57, %v335_v53  ;;  %v324_v4 = vrot.slane %v323_v60, 2 }
 0x14b   :  { %505 = vrcp.f32 %v284_v58  ;;  %v298_v48 = vadd.f32 %v297_v59, %v296_v47  ;;  %v333_v12 = vrot.slane %v332_v5, 1  ;;  %v320_v16 = vadd.f32 %v319_v10, %v318_v1 }
 0x14c   :  { %v290_v2 = vrot.slane %v289_v62, 1  ;;  %v303_v3 = vadd.f32 %v302_v63, %v301_v56  ;;  %v338_v9 = vrot.slane %v337_v0, 2  ;;  %v325_v8 = vadd.f32 %v324_v4, %v323_v60 }
 0x14d   :  { %507 = vrcp.f32 %v298_v48  ;;  %v334_v20 = vadd.f32 %v333_v12, %v332_v5  ;;  %v357_v22 = vunpack.c.0.s8 %v356_v14 }
 0x14e   :  { %v291_v6 = vadd.f32 %v290_v2, %v289_v62  ;;  %v304_v7 = vrot.slane %v303_v3, 1  ;;  %v339_v15 = vadd.f32 %v338_v9, %v337_v0  ;;  %v326_v18 = vrot.slane %v325_v8, 1 }
 0x14f   :  { %v360_v27 = vsub.s32 %v357_v22, %v798_v52 }
 0x150   :  { %509 = vrcp.f32 %v291_v6  ;;  %v305_v11 = vadd.f32 %v304_v7, %v303_v3  ;;  %v340_v23 = vrot.slane %v339_v15, 1  ;;  %v327_v25 = vadd.f32 %v326_v18, %v325_v8 }
 0x152   :  { %511 = vrcp.f32 %v305_v11  ;;  %v341_v45 = vadd.f32 %v340_v23, %v339_v15 }
 0x155   :  { %v506_v17 = vpop.eup %505 }
 0x156   :  { %v343_v19 = vmul.f32 %v506_v17, %v320_v16 }
 0x157   :  { %v508_v21 = vpop.eup %507 }
 0x158   :  { %v347_v24 = vmul.f32 %v508_v21, %v334_v20 }
 0x15a   :  { %v510_v26 = vpop.eup %509 }
 0x15b   :  { %v345_v28 = vmul.f32 %v510_v26, %v327_v25 }
 0x15c   :  { %v512_v29 = vpop.eup %511 }
 0x15d   :  { %v354_v30 = vcombine.low %v343_v19, %v345_v28  ;;  %v349_v31 = vmul.f32 %v512_v29, %v341_v45 }
 0x15f   :  { %v361_v49 = vrot.slane %v354_v30, %v360_v27  ;;  %v362_v46 = vcombine.low %v347_v24, %v349_v31 }
 0x161   :  { %v369_v32 = vrot.slane %v362_v46, %v360_v27 }
 0x163   :  { %v374_v33 = vrot.slane %v369_v32, 7 }
 0x165   :  { %v376_v34 = vsel %vm375_vm8, %v374_v33, %v361_v49 }
 0x166   :  { %v378_v35 = vsel %vm377_vm9, %v374_v33, %v376_v34 }
 0x167   :  { %v380_v36 = vsel %vm379_vm10, %v374_v33, %v378_v35 }
 0x168   :  { %v382_v50 = vsel %vm381_vm11, %v374_v33, %v380_v36 }
 0x169   :  { %384 = vst [vmem:[%s825_s4] sm:$0xf] %v382_v50 }

</bundles_post_ra>
